<compile_context>
chip_gen: v5e
topology: v5e:2x2
jax: 0.10.0
libtpu: 0.0.40
codegen_flags: <defaults>
</compile_context>

<pallas_src>
import jax
import jax.numpy as jnp
from jax.experimental import pallas as pl
from jax.experimental.pallas import tpu as pltpu

LN_EPS = 1e-12          # BERT-style LayerNorm epsilon
TILE_N_DEFAULT = 256    # rows per grid step (multiple of 8 for f32)


def _round_up(x, m):
    return ((x + m - 1) // m) * m


def _lm_transform_kernel(x_ref, w_ref, b_ref, g_ref, beta_ref, o_ref):
    # x_ref: (TILE_N, H)  w_ref: (H, E)  b/g/beta: (1, E)  o_ref: (TILE_N, E)
    x = x_ref[...]
    w = w_ref[...]

    # dense: x @ W^T + b   (W stored pre-transposed as (H, E)) -> MXU, f32 acc
    y = jnp.dot(x, w, preferred_element_type=jnp.float32) + b_ref[...]

    # exact (erf-based) GELU, matching torch.nn.functional.gelu default
    y = 0.5 * y * (1.0 + jax.lax.erf(y * (1.0 / jnp.sqrt(2.0).astype(jnp.float32))))

    # LayerNorm over the last (embedding) axis, all in f32
    mean = jnp.mean(y, axis=-1, keepdims=True)
    yc = y - mean
    var = jnp.mean(yc * yc, axis=-1, keepdims=True)
    inv = jax.lax.rsqrt(var + LN_EPS)
    o_ref[...] = (yc * inv * g_ref[...] + beta_ref[...]).astype(o_ref.dtype)


def lm_transform(features, weight_t, bias, gamma, beta, tile_n=TILE_N_DEFAULT):
    """features: [B, S, H] or [N, H]; weight_t: [H, E]; bias/gamma/beta: [E]."""
    orig_shape = features.shape
    H = orig_shape[-1]
    E = weight_t.shape[1]
    x2d = features.reshape(-1, H)
    N = x2d.shape[0]

    # Choose a row tile: multiple of 8 (f32 sublane), never larger than the
    # (sublane-rounded) problem itself for tiny inputs.
    tile_n = min(tile_n, _round_up(N, 8))
    tile_n = _round_up(tile_n, 8)

    # Pad rows so every grid step gets a full tile (pad rows sliced off below).
    n_pad = _round_up(N, tile_n)
    if n_pad != N:
        x2d = jnp.pad(x2d, ((0, n_pad - N), (0, 0)))

    grid = (n_pad // tile_n,)

    # VMEM budget: resident weight+params + double-buffered x/out tiles, with
    # 2x headroom, clamped to a range safe on v5e/v6e (128 MiB) and v7x (64 MiB).
    itemsize = jnp.dtype(features.dtype).itemsize
    resident = 4 * H * E + 3 * 4 * E                       # weight/bias/gamma/beta (f32)
    tiles = 2 * tile_n * H * itemsize + 2 * tile_n * E * itemsize
    vmem_limit = int(min(max(2 * (resident + tiles), 32 * 1024 * 1024),
                         64 * 1024 * 1024))

    out = pl.pallas_call(
        _lm_transform_kernel,
        out_shape=jax.ShapeDtypeStruct((n_pad, E), features.dtype),
        grid_spec=pltpu.PrefetchScalarGridSpec(
            num_scalar_prefetch=0,
            grid=grid,
            in_specs=[
                pl.BlockSpec((tile_n, H), lambda i: (i, 0)),   # row tile: pipelined
                pl.BlockSpec((H, E), lambda i: (0, 0)),        # weight: resident
                pl.BlockSpec((1, E), lambda i: (0, 0)),        # bias:   resident
                pl.BlockSpec((1, E), lambda i: (0, 0)),        # gamma:  resident
                pl.BlockSpec((1, E), lambda i: (0, 0)),        # beta:   resident
            ],
            out_specs=pl.BlockSpec((tile_n, E), lambda i: (i, 0)),
        ),
        compiler_params=pltpu.CompilerParams(
            dimension_semantics=("parallel",),   # lets v7x shard rows across 2 TCs
            vmem_limit_bytes=vmem_limit,
        ),
    )(x2d, weight_t, bias.reshape(1, E), gamma.reshape(1, E), beta.reshape(1, E))

    out = out[:N]
    return out.reshape(orig_shape[:-1] + (E,))


if __name__ == "__main__":
    # Small shapes consistent with the module: batch=2, seq=8, hidden=32, embedding=64.
    B, S, H, E = 2, 8, 32, 64
    key = jax.random.PRNGKey(0)
    k_x, k_w = jax.random.split(key, 2)

    features = jax.random.normal(k_x, (B, S, H), dtype=jnp.float32)

    # Deterministic parameter init mirroring the module's __init__:
    #   dense.weight ~ N(0, 0.02), dense.bias = 0, LayerNorm gamma=1, beta=0.
    weight = 0.02 * jax.random.normal(k_w, (E, H), dtype=jnp.float32)  # torch layout [E, H]
    weight_t = weight.T  # [H, E] for the kernel matmul
    bias = jnp.zeros((E,), dtype=jnp.float32)
    gamma = jnp.ones((E,), dtype=jnp.float32)
    beta = jnp.zeros((E,), dtype=jnp.float32)

    out = lm_transform(features, weight_t, bias, gamma, beta)
    jax.block_until_ready(out)

    # Reference check in plain JAX (same math path).
    y_ref = features @ weight_t + bias
    y_ref = 0.5 * y_ref * (1.0 + jax.lax.erf(y_ref / jnp.sqrt(2.0)))
    mu = jnp.mean(y_ref, axis=-1, keepdims=True)
    var = jnp.mean((y_ref - mu) ** 2, axis=-1, keepdims=True)
    y_ref = (y_ref - mu) / jnp.sqrt(var + LN_EPS) * gamma + beta
    assert out.shape == (B, S, E), f"bad output shape {out.shape}"
    assert jnp.allclose(out, y_ref, atol=1e-5, rtol=1e-5), "mismatch vs reference"

    print("KERNEL_OK")
</pallas_src>

<mosaic_0001>
module attributes {stable_mosaic.version = 11 : i64} {
  func.func @_lm_transform_kernel(%arg0: i32, %arg1: memref<16x32xf32, #tpu.memory_space<vmem>>, %arg2: memref<32x64xf32, #tpu.memory_space<vmem>>, %arg3: memref<1x64xf32, #tpu.memory_space<vmem>>, %arg4: memref<1x64xf32, #tpu.memory_space<vmem>>, %arg5: memref<1x64xf32, #tpu.memory_space<vmem>>, %arg6: memref<16x64xf32, #tpu.memory_space<vmem>>) attributes {dimension_semantics = [#tpu.dimension_semantics<parallel>], iteration_bounds = array<i64: 1>, scalar_prefetch = 0 : i64, scratch_operands = 0 : i64, tpu.core_type = #tpu.core_type<tc>, window_params = [{transform_indices = @transform_0, window_bounds = array<i64: 16, 32>}, {pipeline_mode = #tpu.pipeline_mode<synchronous>, transform_indices = @transform_1, window_bounds = array<i64: 32, 64>}, {pipeline_mode = #tpu.pipeline_mode<synchronous>, transform_indices = @transform_2, window_bounds = array<i64: 1, 64>}, {pipeline_mode = #tpu.pipeline_mode<synchronous>, transform_indices = @transform_3, window_bounds = array<i64: 1, 64>}, {pipeline_mode = #tpu.pipeline_mode<synchronous>, transform_indices = @transform_4, window_bounds = array<i64: 1, 64>}, {transform_indices = @transform_5, window_bounds = array<i64: 16, 64>}]} {
    %c0 = arith.constant 0 : index
    %c0_0 = arith.constant 0 : index
    %0 = vector.load %arg1[%c0, %c0_0] : memref<16x32xf32, #tpu.memory_space<vmem>>, vector<16x32xf32>
    %c0_1 = arith.constant 0 : index
    %c0_2 = arith.constant 0 : index
    %1 = vector.load %arg2[%c0_1, %c0_2] : memref<32x64xf32, #tpu.memory_space<vmem>>, vector<32x64xf32>
    %cst = arith.constant dense<0.000000e+00> : vector<16x64xf32>
    %2 = tpu.matmul %0, %1, %cst {dimension_numbers = #tpu.dot_dimension_numbers<[1], [0], [0], [1], [0, 0, 1, 1], [], []>} : vector<16x32xf32>, vector<32x64xf32>, vector<16x64xf32> -> vector<16x64xf32>
    %c0_3 = arith.constant 0 : index
    %c0_4 = arith.constant 0 : index
    %3 = vector.load %arg3[%c0_3, %c0_4] : memref<1x64xf32, #tpu.memory_space<vmem>>, vector<1x64xf32>
    %4 = vector.broadcast %3 : vector<1x64xf32> to vector<16x64xf32>
    %5 = arith.addf %2, %4 : vector<16x64xf32>
    %cst_5 = arith.constant 5.000000e-01 : f32
    %6 = vector.broadcast %cst_5 : f32 to vector<16x64xf32>
    %7 = arith.mulf %6, %5 : vector<16x64xf32>
    %cst_6 = arith.constant 2.000000e+00 : f32
    %8 = math.sqrt %cst_6 : f32
    %cst_7 = arith.constant 1.000000e+00 : f32
    %9 = arith.divf %cst_7, %8 : f32
    %10 = vector.broadcast %9 : f32 to vector<16x64xf32>
    %11 = arith.mulf %5, %10 : vector<16x64xf32>
    %12 = math.erf %11 : vector<16x64xf32>
    %cst_8 = arith.constant 1.000000e+00 : f32
    %13 = vector.broadcast %cst_8 : f32 to vector<16x64xf32>
    %14 = arith.addf %13, %12 : vector<16x64xf32>
    %15 = arith.mulf %7, %14 : vector<16x64xf32>
    %cst_9 = arith.constant dense<0.000000e+00> : vector<16xf32>
    %16 = vector.multi_reduction <add>, %15, %cst_9 [1] : vector<16x64xf32> to vector<16xf32>
    %17 = vector.shape_cast %16 : vector<16xf32> to vector<16x1xf32>
    %cst_10 = arith.constant 6.400000e+01 : f32
    %18 = vector.broadcast %cst_10 : f32 to vector<16x1xf32>
    %19 = arith.divf %17, %18 : vector<16x1xf32>
    %20 = vector.broadcast %19 : vector<16x1xf32> to vector<16x64xf32>
    %21 = arith.subf %15, %20 : vector<16x64xf32>
    %22 = arith.mulf %21, %21 : vector<16x64xf32>
    %cst_11 = arith.constant dense<0.000000e+00> : vector<16xf32>
    %23 = vector.multi_reduction <add>, %22, %cst_11 [1] : vector<16x64xf32> to vector<16xf32>
    %24 = vector.shape_cast %23 : vector<16xf32> to vector<16x1xf32>
    %cst_12 = arith.constant 6.400000e+01 : f32
    %25 = vector.broadcast %cst_12 : f32 to vector<16x1xf32>
    %26 = arith.divf %24, %25 : vector<16x1xf32>
    %cst_13 = arith.constant 9.99999996E-13 : f32
    %27 = vector.broadcast %cst_13 : f32 to vector<16x1xf32>
    %28 = arith.addf %26, %27 : vector<16x1xf32>
    %29 = math.rsqrt %28 : vector<16x1xf32>
    %30 = vector.broadcast %29 : vector<16x1xf32> to vector<16x64xf32>
    %31 = arith.mulf %21, %30 : vector<16x64xf32>
    %c0_14 = arith.constant 0 : index
    %c0_15 = arith.constant 0 : index
    %32 = vector.load %arg4[%c0_14, %c0_15] : memref<1x64xf32, #tpu.memory_space<vmem>>, vector<1x64xf32>
    %33 = vector.broadcast %32 : vector<1x64xf32> to vector<16x64xf32>
    %34 = arith.mulf %31, %33 : vector<16x64xf32>
    %c0_16 = arith.constant 0 : index
    %c0_17 = arith.constant 0 : index
    %35 = vector.load %arg5[%c0_16, %c0_17] : memref<1x64xf32, #tpu.memory_space<vmem>>, vector<1x64xf32>
    %36 = vector.broadcast %35 : vector<1x64xf32> to vector<16x64xf32>
    %37 = arith.addf %34, %36 : vector<16x64xf32>
    %c0_18 = arith.constant 0 : index
    %c0_19 = arith.constant 0 : index
    %38 = vector.load %arg6[%c0_18, %c0_19] : memref<16x64xf32, #tpu.memory_space<vmem>>, vector<16x64xf32>
    tpu.vector_store %arg6[%c0_18, %c0_19], %37 {strides = array<i32>} : memref<16x64xf32, #tpu.memory_space<vmem>>, vector<16x64xf32>,
    return
  }
  func.func @transform_0(%arg0: i32) -> (i32, i32) {
    %c0_i32 = arith.constant 0 : i32
    %c0_i32_0 = arith.constant 0 : i32
    return %arg0, %c0_i32 : i32, i32
  }
  func.func @transform_1(%arg0: i32) -> (i32, i32) {
    %c0_i32 = arith.constant 0 : i32
    %c0_i32_0 = arith.constant 0 : i32
    %c0_i32_1 = arith.constant 0 : i32
    return %c0_i32, %c0_i32_0 : i32, i32
  }
  func.func @transform_2(%arg0: i32) -> (i32, i32) {
    %c0_i32 = arith.constant 0 : i32
    %c0_i32_0 = arith.constant 0 : i32
    %c0_i32_1 = arith.constant 0 : i32
    return %c0_i32, %c0_i32_0 : i32, i32
  }
  func.func @transform_3(%arg0: i32) -> (i32, i32) {
    %c0_i32 = arith.constant 0 : i32
    %c0_i32_0 = arith.constant 0 : i32
    %c0_i32_1 = arith.constant 0 : i32
    return %c0_i32, %c0_i32_0 : i32, i32
  }
  func.func @transform_4(%arg0: i32) -> (i32, i32) {
    %c0_i32 = arith.constant 0 : i32
    %c0_i32_0 = arith.constant 0 : i32
    %c0_i32_1 = arith.constant 0 : i32
    return %c0_i32, %c0_i32_0 : i32, i32
  }
  func.func @transform_5(%arg0: i32) -> (i32, i32) {
    %c0_i32 = arith.constant 0 : i32
    %c0_i32_0 = arith.constant 0 : i32
    return %arg0, %c0_i32 : i32, i32
  }
}

</mosaic_0001>

<bundles_post_ra>
// kernel: tpu_custom_call.1
= control target key start
LH: loop header
LB: loop body
LE: loop exit
PB: predicated region body
PF: predicated region fallthrough
CT: control target
= control target key end

     0   :  { %10 = vsyncpa [#allocation3], 0  ;;  %s459_s0 = inlined_call_operand.hbm [shape: f32[16,32], index: 0, kind: input, shape index: {}]   ;;  %s460_s1 = inlined_call_operand.hbm [shape: f32[32,64], index: 1, kind: input, shape index: {}]   ;;  %s461_s2 = inlined_call_operand.vmem [shape: f32[1,64], index: 2, kind: input, shape index: {}]   ;;  %s462_s3 = inlined_call_operand.vmem [shape: f32[1,64], index: 3, kind: input, shape index: {}]   ;;  %s463_s4 = inlined_call_operand.vmem [shape: f32[1,64], index: 4, kind: input, shape index: {}]   ;;  %s464_s5 = inlined_call_operand.hbm [shape: f32[16,64], index: 5, kind: output, shape index: {}]  }
   0x1   :  { %11 = vsyncpa [#allocation6], 0 }
   0x2   :  { %12 = vsyncpa [#allocation4], 0  ;;  %s17_s20 = sshll.u32 %s459_s0, 4  ;;  %s372_s21 = smov [#allocation2]   ;;  %s18_s20 = int_to_ptr.hbm [resolvable:$true] %s17_s20 }
   0x3   :  { %s19_s22 = sshll.u32 %s372_s21, 4  ;;  %s30_s25 = sshll.u32 %s460_s1, 4  ;;  %s20_s22 = int_to_ptr.vmem [resolvable:$true] %s19_s22  ;;  %s31_s25 = int_to_ptr.hbm [resolvable:$true] %s30_s25 }
   0x4   :  { %s373_s26 = smov 128   ;;  %s374_s27 = smov 8  }
   0x5   :  { %25 = dma.hbm_to_vmem [thread:$0]  %s18_s20, 256, %s20_s22, [#allocation3], %s373_s26, %s373_s26, %s374_s27  }
   0x6   :  { %s375_s28 = smov [#allocation5]  }
   0x7   :  { %s32_s29 = sshll.u32 %s375_s28, 4  ;;  %s33_s29 = int_to_ptr.vmem [resolvable:$true] %s32_s29 }
   0x8   :  { %38 = dma.hbm_to_vmem [thread:$0]  %s31_s25, 512, %s33_s29, [#allocation6], %s373_s26, %s373_s26, %s374_s27  }
   0x9   :  { %366 = dma.done.wait [#allocation3], 256  }
   0xa   :  { %367 = vsyncadd [#allocation3], 4294967040 }
   0xb   :  { %368 = dma.done.wait [#allocation6], 512  }
   0xc   :  { %369 = vsyncadd [#allocation6], 4294966784  ;;  %v58_v0 = vld [vmem:[#allocation5 + $0x18] sm:$0xff]  ;;  %v57_v1 = vld [vmem:[#allocation5 + $0x10] sm:$0xff]  ;;  %vm63_vm0 = vcmask 261120   ;;  %vm181_vm9 = vcmask 523264  }
   0xd   :  { %82 = vmatpush.msra.mxu0 %v58_v0  ;;  %271 = vmatpush.msra.mxu1 %v58_v0  ;;  %v56_v2 = vld [vmem:[#allocation5 + $0x8] sm:$0xff]  ;;  %v55_v3 = vld [vmem:[#allocation5] sm:$0xff]  ;;  %v53_v4 = vld [vmem:[#allocation2] sm:$0xff]  ;;  %s253_s11 = sshll.u32 %s464_s5, 4  ;;  %s254_s11 = int_to_ptr.hbm [resolvable:$true] %s253_s11 }
   0xe   :  { %v54_v5 = vld [vmem:[#allocation2 + $0x8] sm:$0xff]  ;;  %v281_v6 = vld [vmem:[%s461_s2] ss:$0 sm:$0xff] }
   0xf   :  { %83 = vmatpush.msra.mxu0 %v57_v1  ;;  %272 = vmatpush.msra.mxu1 %v57_v1 }
  0x11   :  { %84 = vmatpush.msra.mxu0 %v56_v2  ;;  %273 = vmatpush.msra.mxu1 %v56_v2 }
  0x13   :  { %85 = vmatpush.msra.mxu0 %v55_v3  ;;  %274 = vmatpush.msra.mxu1 %v55_v3 }
  0x14   :  { %267 = vmatmul.msk.f32.vlgmr.msra.gmra.mxu0 %vm63_vm0, %v53_v4  ;;  %268 = vmatmul.msk.f32.vlgmr.msra.gmra.mxu1 %vm63_vm0, %v54_v5 }
  0x91   :  { %v87_v7 = vpop.f32.mrf.mxu0  ;;  %v90_v8 = vpop.f32.mrf.mxu1 }
  0x92   :  { %v423_v9 = vadd.f32 %v281_v6, %v87_v7  ;;  %v425_v10 = vadd.f32 %v281_v6, %v90_v8 }
  0x94   :  { %v428_v11 = vmul.f32 0.70710677, %v423_v9  ;;  %v431_v12 = vmul.f32 0.70710677, %v425_v10 }
  0x96   :  { %v97_v13 = vmul.f32 %v428_v11, %v428_v11  ;;  %v137_v14 = vmul.f32 %v431_v12, %v431_v12 }
  0x98   :  { %v98_v15 = vmin.f32 %v97_v13, 16.0  ;;  %v138_v16 = vmin.f32 %v137_v14, 16.0 }
  0x9a   :  { %v99_v17 = vmul.f32 2.1237322e-06, %v98_v15  ;;  %v139_v18 = vmul.f32 2.1237322e-06, %v138_v16  ;;  %v110_v19 = vmul.f32 3.8918573e-05, %v98_v15 }
  0x9b   :  { %v150_v20 = vmul.f32 3.8918573e-05, %v138_v16 }
  0x9c   :  { %v100_v21 = vadd.f32 0.00028619796, %v99_v17  ;;  %v140_v22 = vadd.f32 0.00028619796, %v139_v18  ;;  %v111_v23 = vadd.f32 0.001143296, %v110_v19 }
  0x9d   :  { %v151_v24 = vadd.f32 0.001143296, %v150_v20 }
  0x9e   :  { %v101_v25 = vmul.f32 %v100_v21, %v98_v15  ;;  %v141_v26 = vmul.f32 %v140_v22, %v138_v16  ;;  %v112_v27 = vmul.f32 %v111_v23, %v98_v15  ;;  %v93_v22 = vmul.f32 0.5, %v423_v9 }
  0x9f   :  { %v152_v28 = vmul.f32 %v151_v24, %v138_v16 }
  0xa0   :  { %v102_v29 = vadd.f32 0.0036580483, %v101_v25  ;;  %v113_v30 = vadd.f32 0.014752088, %v112_v27  ;;  %v142_v32 = vadd.f32 0.0036580483, %v141_v26 }
  0xa1   :  { %v153_v31 = vadd.f32 0.014752088, %v152_v28  ;;  %v94_v27 = vmul.f32 0.5, %v425_v10 }
  0xa2   :  { %v114_v33 = vmul.f32 %v113_v30, %v98_v15  ;;  %v103_v35 = vmul.f32 %v102_v29, %v98_v15  ;;  %v143_v38 = vmul.f32 %v142_v32, %v138_v16  ;;  %v376_v29 = vmov 64.0  }
  0xa3   :  { %v154_v34 = vmul.f32 %v153_v31, %v138_v16 }
  0xa4   :  { %v115_v36 = vadd.f32 0.112945676, %v114_v33  ;;  %v104_v41 = vadd.f32 0.05243302, %v103_v35  ;;  %v144_v44 = vadd.f32 0.05243302, %v143_v38 }
  0xa5   :  { %v155_v37 = vadd.f32 0.112945676, %v154_v34 }
  0xa6   :  { %v116_v39 = vmul.f32 %v115_v36, %v98_v15  ;;  %v105_v47 = vmul.f32 %v104_v41, %v98_v15  ;;  %v145_v50 = vmul.f32 %v144_v44, %v138_v16 }
  0xa7   :  { %v156_v40 = vmul.f32 %v155_v37, %v138_v16 }
  0xa8   :  { %v117_v42 = vadd.f32 0.4994258, %v116_v39  ;;  %v106_v51 = vadd.f32 0.18741608, %v105_v47  ;;  %v146_v52 = vadd.f32 0.18741608, %v145_v50 }
  0xa9   :  { %v157_v43 = vadd.f32 0.4994258, %v156_v40 }
  0xaa   :  { %v118_v45 = vmul.f32 %v117_v42, %v98_v15  ;;  %v107_v54 = vmul.f32 %v106_v51, %v98_v15  ;;  %v147_v57 = vmul.f32 %v146_v52, %v138_v16 }
  0xab   :  { %v158_v46 = vmul.f32 %v157_v43, %v138_v16 }
  0xac   :  { %v119_v48 = vadd.f32 1.0, %v118_v45  ;;  %v108_v60 = vadd.f32 1.1283791, %v107_v54  ;;  %v148_v2 = vadd.f32 1.1283791, %v147_v57 }
  0xad   :  { %v159_v49 = vadd.f32 1.0, %v158_v46 }
  0xae   :  { %284 = vrcp.f32 %v119_v48  ;;  %v131_v61 = vand.u32 2147483648, %v119_v48  ;;  %v129_v0 = vand.u32 2147483647, %v119_v48  ;;  %vm125_vm3 = vweird.f32 %v119_v48 }
  0xaf   :  { %286 = vrcp.f32 %v159_v49  ;;  %v171_v1 = vand.u32 2147483648, %v159_v49  ;;  %v169_v4 = vand.u32 2147483647, %v159_v49  ;;  %vm165_vm5 = vweird.f32 %v159_v49 }
  0xb0   :  { %v132_v6 = vor.u32 1.1754944e-38, %v131_v61  ;;  %v109_v8 = vmul.f32 %v108_v60, %v428_v11  ;;  %vm130_vm6 = vcmp.eq.f32.partialorder %v129_v0, 8.507059e+37  ;;  %v149_v15 = vmul.f32 %v148_v2, %v431_v12 }
  0xb1   :  { %v172_v14 = vor.u32 1.1754944e-38, %v171_v1  ;;  %vm170_vm8 = vcmp.eq.f32.partialorder %v169_v4, 8.507059e+37  ;;  %288 = vrcp.f32 %v376_v29 }
  0xb4   :  { %v285_v53 = vpop.eup %284 }
  0xb5   :  { %v287_v55 = vpop.eup %286  ;;  %v121_v56 = vmul.f32 %v285_v53, %v119_v48  ;;  %vm126_vm1 = vweird.f32 %v285_v53 }
  0xb6   :  { %v161_v58 = vmul.f32 %v287_v55, %v159_v49  ;;  %vm166_vm2 = vweird.f32 %v287_v55  ;;  %vm127_vm4 = vmor %vm125_vm3, %vm126_vm1 }
  0xb7   :  { %v122_v59 = vsub.f32 1.0, %v121_v56  ;;  %vm167_vm7 = vmor %vm165_vm5, %vm166_vm2  ;;  %v289_v30 = vpop.eup %288 }
  0xb8   :  { %v162_v62 = vsub.f32 1.0, %v161_v58  ;;  %v189_v31 = vmul.f32 64.0, %v289_v30  ;;  %vm193_vm10 = vweird.f32 %v289_v30  ;;  %v282_v58 = vld [vmem:[%s462_s3] ss:$0 sm:$0xff]  ;;  %s377_s3 = smov [#allocation7]  }
  0xb9   :  { %v123_v63 = vmul.f32 %v285_v53, %v122_v59  ;;  %s251_s8 = sshll.u32 %s377_s3, 4  ;;  %s252_s8 = int_to_ptr.vmem [resolvable:$true] %s251_s8 }
  0xba   :  { %v163_v3 = vmul.f32 %v287_v55, %v162_v62  ;;  %v190_v32 = vsub.f32 1.0, %v189_v31  ;;  %v283_v62 = vld [vmem:[%s463_s4] ss:$0 sm:$0xff] }
  0xbb   :  { %v124_v5 = vadd.f32 %v285_v53, %v123_v63 }
  0xbc   :  { %v164_v7 = vadd.f32 %v287_v55, %v163_v3  ;;  %v191_v9 = vmul.f32 %v289_v30, %v190_v32 }
  0xbd   :  { %v128_v13 = vsel %vm127_vm4, %v285_v53, %v124_v5 }
  0xbe   :  { %v133_v16 = vsel %vm130_vm6, %v132_v6, %v128_v13  ;;  %v168_v17 = vsel %vm167_vm7, %v287_v55, %v164_v7  ;;  %v192_v33 = vadd.f32 %v289_v30, %v191_v9 }
  0xbf   :  { %v134_v18 = vmul.f32 %v133_v16, %v109_v8  ;;  %v173_v19 = vsel %vm170_vm8, %v172_v14, %v168_v17 }
  0xc0   :  { %v174_v20 = vmul.f32 %v173_v19, %v149_v15  ;;  %v194_v34 = vsel %vm193_vm10, %v289_v30, %v192_v33 }
  0xc1   :  { %v269_v21 = vclamps-f32 %v134_v18, 1.0 }
  0xc2   :  { %v270_v24 = vclamps-f32 %v174_v20, 1.0 }
  0xc3   :  { %v177_v23 = vadd.f32 1.0, %v269_v21 }
  0xc4   :  { %v178_v26 = vadd.f32 1.0, %v270_v24 }
  0xc5   :  { %v179_v25 = vmul.f32 %v177_v23, %v93_v22 }
  0xc6   :  { %v180_v12 = vmul.f32 %v178_v26, %v94_v27 }
  0xc7   :  { %v182_v11 = vsel %vm181_vm9, %v179_v25, 0.0 }
  0xc8   :  { %183 = vadd.xlane.f32.xlu0 %v182_v11  ;;  %v185_v28 = vsel %vm181_vm9, %v180_v12, 0.0 }
  0xd0   :  { %186 = vadd.xlane.f32.xlu0 %v185_v28 }
 0x13b   :  { %v184_v35 = vpop.xlane.xlu0 %183 }
 0x13c   :  { %v195_v36 = vmul.f32 %v194_v34, %v184_v35 }
 0x13e   :  { %v197_v37 = vsub.f32 %v179_v25, %v195_v36 }
 0x140   :  { %v199_v38 = vmul.f32 %v197_v37, %v197_v37 }
 0x142   :  { %v201_v39 = vsel %vm181_vm9, %v199_v38, 0.0 }
 0x143   :  { %202 = vadd.xlane.f32.xlu1 %v201_v39  ;;  %v187_v10 = vpop.xlane.xlu0 %186 }
 0x144   :  { %v196_v40 = vmul.f32 %v194_v34, %v187_v10 }
 0x146   :  { %v198_v41 = vsub.f32 %v180_v12, %v196_v40 }
 0x148   :  { %v200_v42 = vmul.f32 %v198_v41, %v198_v41 }
 0x14a   :  { %v204_v43 = vsel %vm181_vm9, %v200_v42, 0.0 }
 0x14b   :  { %205 = vadd.xlane.f32.xlu1 %v204_v43 }
 0x1b6   :  { %v203_v44 = vpop.xlane.xlu1 %202 }
 0x1b7   :  { %v207_v45 = vmul.f32 %v203_v44, %v194_v34 }
 0x1b9   :  { %v209_v46 = vadd.f32 1e-12, %v207_v45 }
 0x1bb   :  { %290 = vrsqrt.f32 %v209_v46  ;;  %vm217_vm12 = vweird.f32 %v209_v46 }
 0x1be   :  { %v206_v47 = vpop.xlane.xlu1 %205 }
 0x1bf   :  { %v208_v48 = vmul.f32 %v206_v47, %v194_v34 }
 0x1c1   :  { %v291_v49 = vpop.eup %290  ;;  %v210_v50 = vadd.f32 1e-12, %v208_v48 }
 0x1c2   :  { %v212_v51 = vmul.f32 %v291_v49, %v209_v46  ;;  %vm218_vm11 = vweird.f32 %v291_v49 }
 0x1c3   :  { %292 = vrsqrt.f32 %v210_v50  ;;  %vm219_vm13 = vmor %vm217_vm12, %vm218_vm11  ;;  %vm227_vm15 = vweird.f32 %v210_v50 }
 0x1c4   :  { %v213_v52 = vmul.f32 %v291_v49, %v212_v51 }
 0x1c6   :  { %v214_v53 = vmul.f32 0.5, %v213_v52 }
 0x1c8   :  { %v215_v54 = vsub.f32 1.5, %v214_v53 }
 0x1c9   :  { %v293_v55 = vpop.eup %292 }
 0x1ca   :  { %v216_v56 = vmul.f32 %v291_v49, %v215_v54  ;;  %v222_v57 = vmul.f32 %v293_v55, %v210_v50  ;;  %vm228_vm14 = vweird.f32 %v293_v55 }
 0x1cb   :  { %vm229_vm0 = vmor %vm227_vm15, %vm228_vm14 }
 0x1cc   :  { %v220_v59 = vsel %vm219_vm13, %v291_v49, %v216_v56  ;;  %v223_v60 = vmul.f32 %v293_v55, %v222_v57 }
 0x1cd   :  { %v231_v61 = vmul.f32 %v220_v59, %v197_v37 }
 0x1ce   :  { %v224_v63 = vmul.f32 0.5, %v223_v60 }
 0x1cf   :  { %v237_v0 = vmul.f32 %v282_v58, %v231_v61 }
 0x1d0   :  { %v225_v1 = vsub.f32 1.5, %v224_v63 }
 0x1d1   :  { %v243_v2 = vadd.f32 %v283_v62, %v237_v0 }
 0x1d2   :  { %v226_v3 = vmul.f32 %v293_v55, %v225_v1 }
 0x1d3   :  { %245 = vst.msk [vmem:[#allocation7] sm:$0xff] %vm181_vm9, %v243_v2 }
 0x1d4   :  { %v230_v4 = vsel %vm229_vm0, %v293_v55, %v226_v3 }
 0x1d5   :  { %v232_v5 = vmul.f32 %v230_v4, %v198_v41 }
 0x1d7   :  { %v238_v6 = vmul.f32 %v282_v58, %v232_v5 }
 0x1d9   :  { %v244_v7 = vadd.f32 %v283_v62, %v238_v6 }
 0x1db   :  { %246 = vst.msk [vmem:[#allocation7 + $0x8] sm:$0xff] %vm181_vm9, %v244_v7 }
 0x1dc   :  { %259 = dma.vmem_to_hbm [thread:$0]  %s252_s8, 256, %s254_s11, [#allocation4], %s373_s26, %s373_s26, %s374_s27  }
 0x1dd   :  { %370 = dma.done.wait [#allocation4], 256  }
 0x1de   :  { %371 = vsyncadd [#allocation4], 4294967040 }
 0x1df   :  { %264 = vsyncpa [#allocation3], 1 }
 0x1e0   :  { %265 = vsyncpa [#allocation6], 1 }
 0x1e1   :  { %266 = vsyncpa [#allocation4], 1 }

</bundles_post_ra>
